<compile_context>
chip_gen: v7x
topology: tpu7x:2x2x1
jax: 0.10.0
libtpu: 0.0.40
codegen_flags: <defaults>
</compile_context>

<pallas_src>
import jax
import jax.numpy as jnp
from jax import lax
from jax.experimental import pallas as pl
from jax.experimental.pallas import tpu as pltpu


def _round_up(n, m):
    return ((n + m - 1) // m) * m


def _mymodel_kernel(x_ref, w_ref, b_ref, o_ref):
    # x_ref: (NBLK, 144) bf16   w_ref: (144, 10) bf16   b_ref: (1, 10) f32
    # o_ref: (NBLK, 10)  f32
    acc = jnp.dot(x_ref[...], w_ref[...], preferred_element_type=jnp.float32)
    o_ref[...] = (acc + b_ref[...]).astype(o_ref.dtype)


def _prepare_params(params):
    """Fold conv1/conv2/fc1/fc2 (all linear, no activations) into one affine map.

    Intermediate feature flattening uses CHW order throughout, which matches
    PyTorch's x.view(-1, 320), so fc1 needs no row permutation.
    Returns (W_total (144,10) bf16, b_total (1,10) f32).
    """
    f32 = jnp.float32
    dn = ("NCHW", "OIHW", "NCHW")

    # conv1: flat 12x12 input (144) -> CHW-flat (10,8,8) = 640, via identity images.
    eye1 = jnp.eye(144, dtype=f32).reshape(144, 1, 12, 12)
    y1 = lax.conv_general_dilated(eye1, params["conv1_w"].astype(f32), (1, 1),
                                  "VALID", dimension_numbers=dn)       # (144, 10, 8, 8)
    wc1 = y1.reshape(144, 640)
    bc1 = jnp.broadcast_to(params["conv1_b"].astype(f32)[:, None], (10, 64)).reshape(1, 640)

    # conv2: CHW-flat (10,8,8) = 640 -> CHW-flat (20,4,4) = 320.
    eye2 = jnp.eye(640, dtype=f32).reshape(640, 10, 8, 8)               # already NCHW
    y2 = lax.conv_general_dilated(eye2, params["conv2_w"].astype(f32), (1, 1),
                                  "VALID", dimension_numbers=dn)       # (640, 20, 4, 4)
    wc2 = y2.reshape(640, 320)
    bc2 = jnp.broadcast_to(params["conv2_b"].astype(f32)[:, None], (20, 16)).reshape(1, 320)

    # fc1 / fc2 (CHW flatten order matches PyTorch exactly).
    wf1 = params["fc1_w"].astype(f32).T                                 # (320, 50)
    bf1 = params["fc1_b"].astype(f32).reshape(1, 50)
    wf2 = params["fc2_w"].astype(f32).T                                 # (50, 10)
    bf2 = params["fc2_b"].astype(f32).reshape(1, 10)

    # Compose everything in float32.
    w_total = wc1 @ wc2 @ wf1 @ wf2                                     # (144, 10)
    b_total = ((bc1 @ wc2 + bc2) @ wf1 + bf1) @ wf2 + bf2               # (1, 10)

    return w_total.astype(jnp.bfloat16), b_total.astype(jnp.float32)


def mymodel_forward(x_nchw, params, *, block_n=1024):
    """x_nchw: (N, 1, 12, 12) float; params in PyTorch shapes. Returns (N, 10) f32."""
    N = x_nchw.shape[0]
    x = x_nchw.reshape(N, 144).astype(jnp.bfloat16)   # lane-dense, bf16 halves HBM traffic

    w_total, b_total = _prepare_params(params)

    # Batch tile: multiple of 16 sublanes (bf16 packing), capped at the batch,
    # and >= 2 grid steps for non-tiny batches so the "parallel" axis can shard
    # across both TensorCores on v7x.
    block_n = _round_up(max(block_n, 16), 16)
    nblk = min(block_n, _round_up(N, 16))
    if N >= 32 and pl.cdiv(N, nblk) < 2:
        nblk = _round_up(pl.cdiv(N, 2), 16)
    nblk = max(nblk, 16)
    grid = (pl.cdiv(N, nblk),)

    # Double-buffered x block + output block + temps, plus headroom.
    vmem_bytes = min(32 << 20, 4 * nblk * (144 * 2 + 16 * 4) + (2 << 20))

    out = pl.pallas_call(
        _mymodel_kernel,
        out_shape=jax.ShapeDtypeStruct((N, 10), jnp.float32),
        grid=grid,
        in_specs=[
            pl.BlockSpec((nblk, 144), lambda i: (i, 0)),   # streamed batch tile
            pl.BlockSpec((144, 10), lambda i: (0, 0)),     # resident folded weight (~3 KiB)
            pl.BlockSpec((1, 10), lambda i: (0, 0)),       # resident folded bias
        ],
        out_specs=pl.BlockSpec((nblk, 10), lambda i: (i, 0)),
        compiler_params=pltpu.CompilerParams(
            dimension_semantics=("parallel",),
            vmem_limit_bytes=vmem_bytes),
    )(x, w_total, b_total)
    return out


def mymodel_reference(x_nchw, params):
    """Pure-JAX f32 reference with PyTorch NCHW semantics, for verification."""
    dn = ("NCHW", "OIHW", "NCHW")
    y = lax.conv_general_dilated(x_nchw, params["conv1_w"], (1, 1), "VALID",
                                 dimension_numbers=dn)
    y = y + params["conv1_b"][None, :, None, None]
    y = lax.conv_general_dilated(y, params["conv2_w"], (1, 1), "VALID",
                                 dimension_numbers=dn)
    y = y + params["conv2_b"][None, :, None, None]
    feat = y.reshape(-1, 320)                                      # CHW flatten
    h1 = feat @ params["fc1_w"].T + params["fc1_b"]
    return h1 @ params["fc2_w"].T + params["fc2_b"]


def make_params(key):
    ks = jax.random.split(key, 8)
    f32 = jnp.float32
    return {
        "conv1_w": 0.1 * jax.random.normal(ks[0], (10, 1, 5, 5), f32),
        "conv1_b": 0.1 * jax.random.normal(ks[1], (10,), f32),
        "conv2_w": 0.1 * jax.random.normal(ks[2], (20, 10, 5, 5), f32),
        "conv2_b": 0.1 * jax.random.normal(ks[3], (20,), f32),
        "fc1_w": 0.05 * jax.random.normal(ks[4], (50, 320), f32),
        "fc1_b": 0.05 * jax.random.normal(ks[5], (50,), f32),
        "fc2_w": 0.1 * jax.random.normal(ks[6], (10, 50), f32),
        "fc2_b": 0.1 * jax.random.normal(ks[7], (10,), f32),
    }


if __name__ == "__main__":
    key = jax.random.PRNGKey(0)
    k_x, k_p = jax.random.split(key)
    params = make_params(k_p)

    # bf16 input/weights with f32 accumulation -> relax tolerance vs f32 reference.
    ATOL = RTOL = 2e-2

    # Small batch: single grid block.
    x_small = jax.random.normal(k_x, (16, 1, 12, 12), jnp.float32)     # (N, C=1, H=12, W=12)
    out = jax.block_until_ready(mymodel_forward(x_small, params))
    ref = mymodel_reference(x_small, params)
    assert out.shape == (16, 10), out.shape
    assert jnp.allclose(out, ref, atol=ATOL, rtol=RTOL)

    # Ragged batch: multi-step grid with a masked edge block (no wrapper-side pad).
    x_rag = jax.random.normal(k_x, (300, 1, 12, 12), jnp.float32)
    out_rag = jax.block_until_ready(mymodel_forward(x_rag, params, block_n=128))
    ref_rag = mymodel_reference(x_rag, params)
    assert out_rag.shape == (300, 10), out_rag.shape
    assert jnp.allclose(out_rag, ref_rag, atol=ATOL, rtol=RTOL)

    # Larger batch: default 1024-row tile, two parallel grid steps (both TCs on v7x).
    x_big = jax.random.normal(k_x, (2048, 1, 12, 12), jnp.float32)
    out_big = jax.block_until_ready(mymodel_forward(x_big, params))
    ref_big = mymodel_reference(x_big, params)
    assert out_big.shape == (2048, 10), out_big.shape
    assert jnp.allclose(out_big, ref_big, atol=ATOL, rtol=RTOL)

    print("KERNEL_OK")
</pallas_src>

<mosaic_0001>
module attributes {stable_mosaic.version = 11 : i64} {
  func.func @_mymodel_kernel(%arg0: i32, %arg1: memref<16x144xbf16, #tpu.memory_space<vmem>>, %arg2: memref<144x10xbf16, #tpu.memory_space<vmem>>, %arg3: memref<1x10xf32, #tpu.memory_space<vmem>>, %arg4: memref<16x10xf32, #tpu.memory_space<vmem>>) attributes {dimension_semantics = [#tpu.dimension_semantics<parallel>], iteration_bounds = array<i64: 1>, scalar_prefetch = 0 : i64, scratch_operands = 0 : i64, tpu.core_type = #tpu.core_type<tc>, window_params = [{transform_indices = @transform_0, window_bounds = array<i64: 16, 144>}, {pipeline_mode = #tpu.pipeline_mode<synchronous>, transform_indices = @transform_1, window_bounds = array<i64: 144, 10>}, {pipeline_mode = #tpu.pipeline_mode<synchronous>, transform_indices = @transform_2, window_bounds = array<i64: 1, 10>}, {transform_indices = @transform_3, window_bounds = array<i64: 16, 10>}]} {
    %c0 = arith.constant 0 : index
    %c0_0 = arith.constant 0 : index
    %0 = vector.load %arg1[%c0, %c0_0] : memref<16x144xbf16, #tpu.memory_space<vmem>>, vector<16x144xbf16>
    %c0_1 = arith.constant 0 : index
    %c0_2 = arith.constant 0 : index
    %1 = vector.load %arg2[%c0_1, %c0_2] : memref<144x10xbf16, #tpu.memory_space<vmem>>, vector<144x10xbf16>
    %cst = arith.constant dense<0.000000e+00> : vector<16x10xf32>
    %2 = tpu.matmul %0, %1, %cst {dimension_numbers = #tpu.dot_dimension_numbers<[1], [0], [0], [1], [0, 0, 1, 1], [], []>} : vector<16x144xbf16>, vector<144x10xbf16>, vector<16x10xf32> -> vector<16x10xf32>
    %c0_3 = arith.constant 0 : index
    %c0_4 = arith.constant 0 : index
    %3 = vector.load %arg3[%c0_3, %c0_4] : memref<1x10xf32, #tpu.memory_space<vmem>>, vector<1x10xf32>
    %4 = vector.broadcast %3 : vector<1x10xf32> to vector<16x10xf32>
    %5 = arith.addf %2, %4 : vector<16x10xf32>
    %c0_5 = arith.constant 0 : index
    %c0_6 = arith.constant 0 : index
    %6 = vector.load %arg4[%c0_5, %c0_6] : memref<16x10xf32, #tpu.memory_space<vmem>>, vector<16x10xf32>
    tpu.vector_store %arg4[%c0_5, %c0_6], %5 {strides = array<i32>} : memref<16x10xf32, #tpu.memory_space<vmem>>, vector<16x10xf32>,
    return
  }
  func.func @transform_0(%arg0: i32) -> (i32, i32) {
    %c0_i32 = arith.constant 0 : i32
    %c0_i32_0 = arith.constant 0 : i32
    return %arg0, %c0_i32 : i32, i32
  }
  func.func @transform_1(%arg0: i32) -> (i32, i32) {
    %c0_i32 = arith.constant 0 : i32
    %c0_i32_0 = arith.constant 0 : i32
    %c0_i32_1 = arith.constant 0 : i32
    return %c0_i32, %c0_i32_0 : i32, i32
  }
  func.func @transform_2(%arg0: i32) -> (i32, i32) {
    %c0_i32 = arith.constant 0 : i32
    %c0_i32_0 = arith.constant 0 : i32
    %c0_i32_1 = arith.constant 0 : i32
    return %c0_i32, %c0_i32_0 : i32, i32
  }
  func.func @transform_3(%arg0: i32) -> (i32, i32) {
    %c0_i32 = arith.constant 0 : i32
    %c0_i32_0 = arith.constant 0 : i32
    return %arg0, %c0_i32 : i32, i32
  }
}

</mosaic_0001>

<bundles_post_ra>
// kernel: tpu_custom_call.1
= control target key start
LH: loop header
LB: loop body
LE: loop exit
PB: predicated region body
PF: predicated region fallthrough
CT: control target
= control target key end

     0   :  { %v223_v1 = vmov 0   ;;  %vm106_vm0 = vcmask 130048   ;;  %s295_s0 = inlined_call_operand.vmem [shape: bf16[16,144], index: 0, kind: input, shape index: {}]   ;;  %s296_s1 = inlined_call_operand.vmem [shape: bf16[144,10], index: 1, kind: input, shape index: {}]   ;;  %s297_s2 = inlined_call_operand.vmem [shape: f32[1,10], index: 2, kind: input, shape index: {}]   ;;  %s298_s3 = inlined_call_operand.hbm [shape: f32[16,10], index: 3, kind: output, shape index: {}]  }
   0x1   :  { %v187_v0 = vld [vmem:[%s296_s1] sm:$0xff]   ;;  %110 = vmatprep.subr.bf16.mxu0 %v223_v1  ;;  %v188_v2 = vld [vmem:[%s296_s1 + $0x8] sm:$0xff]   ;;  %v189_v3 = vld [vmem:[%s296_s1 + $0x10] sm:$0xff]  }
   0x2   :  { %111 = vmatpush1.bf16.msra.mxu0 %v187_v0  ;;  %v190_v4 = vld [vmem:[%s296_s1 + $0x18] sm:$0xff]   ;;  %v198_v5 = vld [vmem:[%s295_s0 + $0x4] ss:$8 sps:$4 sm:$0xff]  }
   0x3   :  { %112 = vmatprep.subr.bf16.mxu0 %v223_v1 }
   0x6   :  { %113 = vmatpush1.bf16.msra.mxu0 %v188_v2 }
   0x7   :  { %114 = vmatprep.subr.bf16.mxu0 %v223_v1 }
   0xa   :  { %115 = vmatpush1.bf16.msra.mxu0 %v189_v3 }
   0xb   :  { %8 = vsyncpa [#allocation3], 0  ;;  %116 = vmatprep.subr.bf16.mxu0 %v223_v1  ;;  %182 = vmatprep.mubr.msk.bf16.mxu0 %vm106_vm0, %v198_v5  ;;  %v191_v6 = vld [vmem:[%s296_s1 + $0x20] sm:$0xff]   ;;  %v192_v7 = vld [vmem:[%s296_s1 + $0x28] sm:$0xff]   ;;  %s224_s9 = smov [#allocation2]   ;;  %vm151_vm1 = vcmask 80896  }
   0xc   :  { %v193_v8 = vld [vmem:[%s296_s1 + $0x30] sm:$0xff]   ;;  %v194_v9 = vld [vmem:[%s296_s1 + $0x38] sm:$0xff]   ;;  %v195_v10 = vld [vmem:[%s296_s1 + $0x40] sm:$0xff]   ;;  %s159_s10 = sshll.u32 %s224_s9, 4  ;;  %s160_s10 = int_to_ptr.vmem [resolvable:$true] %s159_s10 }
   0xd   :  { %v196_v11 = vld [vmem:[%s295_s0] ss:$8 sps:$4 sm:$0xff]   ;;  %s199_s1 = scalar_lea.vmem %s160_s10, 256  ;;  %p204_p1 = scmp.lt.s32.totalorder %s160_s10, %s160_s10 }
   0xe   :  { %117 = vmatpush1.bf16.msra.mxu0 %v190_v4  ;;  %v170_v12 = vld [vmem:[%s297_s2] ss:$0 sm:$0xff]  ;;  %p200_p0 = scmp.ne.s32.totalorder %s160_s10, %s199_s1  ;;  %p205_p2 = scmp.lt.s32.totalorder %s199_s1, %s199_s1 }
   0xf   :  { %118 = vmatprep.subr.bf16.mxu0 %v223_v1 }
  0x10   :  { %p206_p3 = por %p205_p2, %p204_p1 }
  0x12   :  { %119 = vmatpush1.bf16.msra.mxu0 %v191_v6  ;;  %p207_p4 = pnand %p206_p3, %p200_p0 }
  0x13   :  { %120 = vmatprep.subr.bf16.mxu0 %v223_v1 }
  0x16   :  { %121 = vmatpush1.bf16.msra.mxu0 %v192_v7 }
  0x17   :  { %122 = vmatprep.subr.bf16.mxu0 %v223_v1 }
  0x1a   :  { %123 = vmatpush1.bf16.msra.mxu0 %v193_v8 }
  0x1b   :  { %124 = vmatprep.subr.bf16.mxu0 %v223_v1 }
  0x1e   :  { %125 = vmatpush1.bf16.msra.mxu0 %v194_v9 }
  0x1f   :  { %126 = vmatprep.subr.bf16.mxu0 %v223_v1 }
  0x22   :  { %127 = vmatpush1.bf16.msra.mxu0 %v195_v10 }
  0x25   :  { %143 = vmatmul.mubr.bf16.vlgmr.msra.gmra.mrb[0].mxu0 %v196_v11 }
  0xf8   :  { %v144_v13 = vpop.f32.mrb[0].mxu0 }
  0xf9   :  { %v145_v14 = vadd.f32 %v170_v12, %v144_v13  ;;  %v146_v15 = vpop.f32.mrb[1].mxu0 }
  0xfa   :  { %v147_v16 = vpop.f32.mrb[2].mxu0 }
  0xfb   :  { %152 = vst.msk [vmem:[#allocation2] sm:$0xff] %vm151_vm1, %v145_v14  ;;  %v148_v17 = vadd.f32 %v170_v12, %v147_v16  ;;  %v149_v18 = vpop.f32.mrb[3].mxu0 }
  0xfd   :  { %153 = vst.msk [vmem:[#allocation2 + $0x8] sm:$0xff] %vm151_vm1, %v148_v17 }
  0xfe   :  { %210 = shalt.err (!%p207_p4)
}
  0xff   :  { %s211_s11 = scalar_lea.hbm %s298_s3, 256 }
 0x100   :  { %p212_p5 = scmp.ne.s32.totalorder %s298_s3, %s211_s11  ;;  %p215_p6 = scmp.lt.u32.totalorder %s211_s11, %s298_s3 }
 0x102   :  { %p217_p7 = pnand %p215_p6, %p212_p5 }
 0x104   :  { %220 = shalt.err (!%p217_p7)
}
 0x105   :  { %s225_s16 = smov 128   ;;  %s226_s17 = smov 8  }
 0x106   :  { %165 = dma.vmem_to_hbm [thread:$0]  %s160_s10, 256, %s298_s3, [#allocation3], %s225_s16, %s225_s16, %s226_s17  }
 0x107   :  { %221 = dma.done.wait [#allocation3], 256  }
 0x108   :  { %222 = vsyncadd [#allocation3], 4294967040 }
 0x109   :  { %169 = vsyncpa [#allocation3], 1 }

</bundles_post_ra>
